<compile_context>
chip_gen: v7x
topology: tpu7x:2x2x1
jax: 0.10.0
libtpu: 0.0.40
codegen_flags: <defaults>
</compile_context>

<pallas_src>
import functools

import jax
import jax.numpy as jnp
from jax import lax
from jax.experimental import pallas as pl
from jax.experimental.pallas import tpu as pltpu


def _tsm_kernel(T, fold, segs_per_tile,
                x_ref, w1_ref, wpk_ref, bpk_ref, o_ref):
    x = x_ref[...]                                   # (BT_TILE, C) f32
    BT, C = x.shape
    H = w1_ref.shape[1]

    # --- TemporalShift: XLU rolls + one fused mask/select pass ---------------
    x_prev = pltpu.roll(x, shift=1, axis=0)          # out[r] = x[r-1] (wraps)
    x_next = pltpu.roll(x, shift=BT - 1, axis=0)     # out[r] = x[r+1] (wraps)
    row = lax.broadcasted_iota(jnp.int32, (BT, C), 0)
    col = lax.broadcasted_iota(jnp.int32, (BT, C), 1)
    r_in_seg = row % T
    is_prev = col < fold
    is_next = jnp.logical_and(col >= fold, col < 2 * fold)
    shifted = jnp.where(
        jnp.logical_and(is_prev, r_in_seg != 0), x_prev,
        jnp.where(
            jnp.logical_and(is_next, r_in_seg != T - 1), x_next,
            jnp.where(jnp.logical_or(is_prev, is_next),
                      jnp.zeros_like(x), x)))

    # --- feature_extractor (BN folded into W/b; Dropout = identity) ----------
    b1 = bpk_ref[0:1, :]                             # (1, H) f32 bias rows
    ba1 = bpk_ref[1:2, :]
    bb1 = bpk_ref[2:3, :]
    ba2 = bpk_ref[3:4, :]
    bb2 = bpk_ref[4:5, :]

    h = jnp.dot(shifted.astype(jnp.bfloat16), w1_ref[...],
                preferred_element_type=jnp.float32)
    h = jnp.maximum(h + b1, 0.0)

    def resnet_block(h, wa, ba, wb, bb):
        # Linear+BN -> ReLU -> (Dropout=id) -> Linear+BN -> (Dropout=id)
        t = jnp.dot(h.astype(jnp.bfloat16), wa,
                    preferred_element_type=jnp.float32) + ba
        t = jnp.maximum(t, 0.0)
        t = jnp.dot(t.astype(jnp.bfloat16), wb,
                    preferred_element_type=jnp.float32) + bb
        return jnp.maximum(h + t, 0.0)               # relu(x + block(x))

    h = resnet_block(h, wpk_ref[:, 0:H], ba1, wpk_ref[:, H:2 * H], bb1)
    h = resnet_block(h, wpk_ref[:, 2 * H:3 * H], ba2, wpk_ref[:, 3 * H:4 * H], bb2)

    # --- AdaptiveAvgPool1d(1) over T -> lane-dense (segs_per_tile, H) --------
    pooled = jnp.sum(h.reshape(segs_per_tile, T, H), axis=1) * (1.0 / T)
    o_ref[...] = pooled


def pose_correction_tsm_classifier(x, params, *, fold_div=8, rows_per_tile=2048):
    B, T, C = x.shape
    H = params["w1"].shape[1]
    fold = C // fold_div

    # Tile sizing: large row tiles amortize per-grid-step overhead and fill
    # the MXU.  Single tile whenever the batch fits (no forced split on
    # single-TensorCore chips); otherwise segs_per_tile is a multiple of 8 so
    # every block stays sublane-aligned regardless of T.
    segs_target = max(1, rows_per_tile // T)
    if B <= segs_target:
        segs_per_tile = B
        num_tiles = 1
    else:
        segs_per_tile = max(8, (segs_target // 8) * 8)
        num_tiles = pl.cdiv(B, segs_per_tile)
    B_pad = num_tiles * segs_per_tile
    BT_TILE = segs_per_tile * T

    xp = x.astype(jnp.float32)
    if B_pad != B:
        xp = jnp.concatenate(
            [xp, jnp.zeros((B_pad - B, T, C), xp.dtype)], axis=0)
    x_flat = xp.reshape(B_pad * T, C)        # C read as-is (no lane padding)

    # Fold eval-mode BatchNorm into the preceding Linear.
    def fold_bn(w, b, scale, shift):
        return w * scale[None, :], b * scale + shift

    wa1, ba1 = fold_bn(params["wa1"], params["ba1"], params["sa1"], params["ta1"])
    wb1, bb1 = fold_bn(params["wb1"], params["bb1"], params["sb1"], params["tb1"])
    wa2, ba2 = fold_bn(params["wa2"], params["ba2"], params["sa2"], params["ta2"])
    wb2, bb2 = fold_bn(params["wb2"], params["bb2"], params["sb2"], params["tb2"])

    # Pack parameters into 3 refs: first-layer weight, one weight slab, one
    # bias block (f32, 8 rows for a clean sublane tile).
    w1 = params["w1"].astype(jnp.bfloat16)                         # (C, H)
    w_pack = jnp.concatenate([wa1, wb1, wa2, wb2],
                             axis=1).astype(jnp.bfloat16)          # (H, 4H)
    b_rows = jnp.stack([params["b1"], ba1, bb1, ba2, bb2], axis=0)  # (5, H)
    b_pack = jnp.concatenate(
        [b_rows, jnp.zeros((3, H), jnp.float32)], axis=0)           # (8, H)

    in_specs = [
        pl.BlockSpec((BT_TILE, C), lambda i: (i, 0)),
        pl.BlockSpec(w1.shape, lambda i: (0, 0)),
        pl.BlockSpec(w_pack.shape, lambda i: (0, 0)),
        pl.BlockSpec(b_pack.shape, lambda i: (0, 0)),
    ]
    out_specs = pl.BlockSpec((segs_per_tile, H), lambda i: (i, 0))

    flops = 2 * B_pad * T * H * (C + 4 * H)
    bytes_accessed = (x_flat.size * 4 + w1.size * 2 + w_pack.size * 2
                      + b_pack.size * 4 + B_pad * H * 4)

    # Grid-axis semantics: "parallel" everywhere; on v7x with an even tile
    # count, use CORE_PARALLEL so the tile axis is sharded across both TCs.
    dim_sem = ("parallel",)
    try:
        kind = jax.devices()[0].device_kind.lower()
    except Exception:  # pragma: no cover
        kind = ""
    if "v7" in kind and num_tiles >= 2 and num_tiles % 2 == 0:
        dim_sem = (pltpu.CORE_PARALLEL,)

    pooled = pl.pallas_call(
        functools.partial(_tsm_kernel, T, fold, segs_per_tile),
        out_shape=jax.ShapeDtypeStruct((B_pad, H), jnp.float32),
        grid_spec=pltpu.PrefetchScalarGridSpec(
            num_scalar_prefetch=0,
            grid=(num_tiles,),
            in_specs=in_specs,
            out_specs=out_specs,
        ),
        compiler_params=pltpu.CompilerParams(dimension_semantics=dim_sem),
        cost_estimate=pl.CostEstimate(flops=flops, transcendentals=0,
                                      bytes_accessed=bytes_accessed),
    )(x_flat, w1, w_pack, b_pack)

    pooled = pooled[:B]                              # (B, H) lane-dense features
    # Tiny classifier head (128 -> n_cond) + Sigmoid stays in the XLA wrapper
    # (kept in f32) so the kernel's stores stay dense.
    logits = pooled @ params["wc"] + params["bc"]
    return jax.nn.sigmoid(logits)


def init_params(key, input_dim=48, hidden_dim=128, num_conditions=5, eps=1e-5):
    keys = list(jax.random.split(key, 28))
    it = iter(keys)

    def lin(kin, kout, scale=0.05):
        w = scale * jax.random.normal(next(it), (kin, kout), jnp.float32)
        b = 0.1 * jax.random.normal(next(it), (kout,), jnp.float32)
        return w, b

    def bn(dim):
        gamma = 1.0 + 0.1 * jax.random.normal(next(it), (dim,), jnp.float32)
        beta = 0.1 * jax.random.normal(next(it), (dim,), jnp.float32)
        mean = 0.1 * jax.random.normal(next(it), (dim,), jnp.float32)
        var = 1.0 + 0.5 * jax.random.uniform(next(it), (dim,), jnp.float32)
        scale = gamma / jnp.sqrt(var + eps)
        shift = beta - mean * scale
        return scale, shift

    p = {}
    p["w1"], p["b1"] = lin(input_dim, hidden_dim)
    for blk in ("1", "2"):
        p[f"wa{blk}"], p[f"ba{blk}"] = lin(hidden_dim, hidden_dim)
        p[f"sa{blk}"], p[f"ta{blk}"] = bn(hidden_dim)
        p[f"wb{blk}"], p[f"bb{blk}"] = lin(hidden_dim, hidden_dim)
        p[f"sb{blk}"], p[f"tb{blk}"] = bn(hidden_dim)
    p["wc"], p["bc"] = lin(hidden_dim, num_conditions, scale=0.1)
    return p


def reference_forward(x, p, fold_div=8):
    """Pure-JAX f32 reference matching the PyTorch forward (eval mode)."""
    B, T, C = x.shape
    fold = C // fold_div
    out = jnp.zeros_like(x)
    out = out.at[:, 1:, :fold].set(x[:, :-1, :fold])
    out = out.at[:, :-1, fold:2 * fold].set(x[:, 1:, fold:2 * fold])
    out = out.at[:, :, 2 * fold:].set(x[:, :, 2 * fold:])
    h = out.reshape(B * T, C)
    h = jnp.maximum(h @ p["w1"] + p["b1"], 0.0)

    def block(h, blk):
        t = h @ p[f"wa{blk}"] + p[f"ba{blk}"]
        t = t * p[f"sa{blk}"] + p[f"ta{blk}"]
        t = jnp.maximum(t, 0.0)
        t = t @ p[f"wb{blk}"] + p[f"bb{blk}"]
        t = t * p[f"sb{blk}"] + p[f"tb{blk}"]
        return jnp.maximum(h + t, 0.0)

    h = block(h, "1")
    h = block(h, "2")
    h = h.reshape(B, T, -1).mean(axis=1)   # permute + AdaptiveAvgPool1d(1) + Flatten
    return jax.nn.sigmoid(h @ p["wc"] + p["bc"])


if __name__ == "__main__":
    T, C = 8, 48                 # n_segment, input_dim
    hidden_dim, num_conditions = 128, 5

    key = jax.random.PRNGKey(0)
    kx, kp, kx2 = jax.random.split(key, 3)
    params = init_params(kp, input_dim=C, hidden_dim=hidden_dim,
                         num_conditions=num_conditions)

    # Tolerances loosened vs pure-f32 because matmul operands are bf16
    # (f32 accumulation); errors on sigmoid outputs are ~1e-3.
    ATOL, RTOL = 1e-2, 1e-2

    # Small case (single tile).
    B = 2
    x = jax.random.normal(kx, (B, T, C), jnp.float32)
    out = jax.block_until_ready(pose_correction_tsm_classifier(x, params))
    ref = jax.block_until_ready(reference_forward(x, params))
    assert out.shape == (B, num_conditions), out.shape
    assert jnp.allclose(out, ref, atol=ATOL, rtol=RTOL), (out, ref)

    # Larger case exercising the multi-tile + batch-padding path.
    B2 = 520
    x2 = jax.random.normal(kx2, (B2, T, C), jnp.float32)
    out2 = jax.block_until_ready(pose_correction_tsm_classifier(x2, params))
    ref2 = jax.block_until_ready(reference_forward(x2, params))
    assert out2.shape == (B2, num_conditions), out2.shape
    assert jnp.allclose(out2, ref2, atol=ATOL, rtol=RTOL)

    print("KERNEL_OK")
</pallas_src>

<mosaic_0001>
module attributes {stable_mosaic.version = 11 : i64} {
  func.func @_tsm_kernel(%arg0: i32, %arg1: memref<16x48xf32, #tpu.memory_space<vmem>>, %arg2: memref<48x128xbf16, #tpu.memory_space<vmem>>, %arg3: memref<128x512xbf16, #tpu.memory_space<vmem>>, %arg4: memref<8x128xf32, #tpu.memory_space<vmem>>, %arg5: memref<2x128xf32, #tpu.memory_space<vmem>>) attributes {dimension_semantics = [#tpu.dimension_semantics<parallel>], iteration_bounds = array<i64: 1>, scalar_prefetch = 0 : i64, scratch_operands = 0 : i64, tpu.core_type = #tpu.core_type<tc>, window_params = [{transform_indices = @transform_0, window_bounds = array<i64: 16, 48>}, {pipeline_mode = #tpu.pipeline_mode<synchronous>, transform_indices = @transform_1, window_bounds = array<i64: 48, 128>}, {pipeline_mode = #tpu.pipeline_mode<synchronous>, transform_indices = @transform_2, window_bounds = array<i64: 128, 512>}, {pipeline_mode = #tpu.pipeline_mode<synchronous>, transform_indices = @transform_3, window_bounds = array<i64: 8, 128>}, {transform_indices = @transform_4, window_bounds = array<i64: 2, 128>}]} {
    %c0 = arith.constant 0 : index
    %c0_0 = arith.constant 0 : index
    %0 = vector.load %arg1[%c0, %c0_0] : memref<16x48xf32, #tpu.memory_space<vmem>>, vector<16x48xf32>
    %c1_i32 = arith.constant 1 : i32
    %1 = tpu.dynamic_rotate %0 by %c1_i32 dim 0 : vector<16x48xf32>, i32 -> vector<16x48xf32>
    %c15_i32 = arith.constant 15 : i32
    %2 = tpu.dynamic_rotate %0 by %c15_i32 dim 0 : vector<16x48xf32>, i32 -> vector<16x48xf32>
    %3 = tpu.iota {dimensions = array<i32: 0>} : vector<16x48xi32>
    %4 = tpu.iota {dimensions = array<i32: 1>} : vector<16x48xi32>
    %c8_i32 = arith.constant 8 : i32
    %c0_i32 = arith.constant 0 : i32
    %5 = arith.cmpi eq, %c8_i32, %c0_i32 : i32
    %c1_i32_1 = arith.constant 1 : i32
    %6 = arith.select %5, %c1_i32_1, %c8_i32 : i32
    %7 = vector.broadcast %6 : i32 to vector<16x48xi32>
    %8 = arith.remsi %3, %7 : vector<16x48xi32>
    %c0_i32_2 = arith.constant 0 : i32
    %9 = vector.broadcast %c0_i32_2 : i32 to vector<16x48xi32>
    %10 = arith.cmpi ne, %8, %9 : vector<16x48xi32>
    %c0_i32_3 = arith.constant 0 : i32
    %11 = vector.broadcast %c0_i32_3 : i32 to vector<16x48xi32>
    %12 = arith.cmpi slt, %8, %11 : vector<16x48xi32>
    %c0_i32_4 = arith.constant 0 : i32
    %13 = arith.cmpi slt, %6, %c0_i32_4 : i32
    %14 = vector.broadcast %13 : i1 to vector<16x48xi1>
    %15 = vector.broadcast %14 : vector<16x48xi1> to vector<16x48xi1>
    %16 = arith.xori %12, %15 : vector<16x48xi1>
    %17 = arith.andi %16, %10 : vector<16x48xi1>
    %18 = vector.broadcast %6 : i32 to vector<16x48xi32>
    %19 = arith.addi %8, %18 : vector<16x48xi32>
    %20 = arith.select %17, %19, %8 : vector<16x48xi1>, vector<16x48xi32>
    %c6_i32 = arith.constant 6 : i32
    %21 = vector.broadcast %c6_i32 : i32 to vector<16x48xi32>
    %22 = arith.cmpi slt, %4, %21 : vector<16x48xi32>
    %c6_i32_5 = arith.constant 6 : i32
    %23 = vector.broadcast %c6_i32_5 : i32 to vector<16x48xi32>
    %24 = arith.cmpi sge, %4, %23 : vector<16x48xi32>
    %c12_i32 = arith.constant 12 : i32
    %25 = vector.broadcast %c12_i32 : i32 to vector<16x48xi32>
    %26 = arith.cmpi slt, %4, %25 : vector<16x48xi32>
    %27 = arith.andi %24, %26 : vector<16x48xi1>
    %c0_i32_6 = arith.constant 0 : i32
    %28 = vector.broadcast %c0_i32_6 : i32 to vector<16x48xi32>
    %29 = arith.cmpi ne, %20, %28 : vector<16x48xi32>
    %30 = arith.andi %22, %29 : vector<16x48xi1>
    %c7_i32 = arith.constant 7 : i32
    %31 = vector.broadcast %c7_i32 : i32 to vector<16x48xi32>
    %32 = arith.cmpi ne, %20, %31 : vector<16x48xi32>
    %33 = arith.andi %27, %32 : vector<16x48xi1>
    %34 = arith.ori %22, %27 : vector<16x48xi1>
    %cst = arith.constant 0.000000e+00 : f32
    %35 = vector.broadcast %cst : f32 to vector<16x48xf32>
    %36 = arith.select %34, %35, %0 : vector<16x48xi1>, vector<16x48xf32>
    %37 = arith.select %33, %2, %36 : vector<16x48xi1>, vector<16x48xf32>
    %38 = arith.select %30, %1, %37 : vector<16x48xi1>, vector<16x48xf32>
    %c0_7 = arith.constant 0 : index
    %c0_8 = arith.constant 0 : index
    %39 = vector.load %arg4[%c0_7, %c0_8] : memref<8x128xf32, #tpu.memory_space<vmem>>, vector<1x128xf32>
    %c1 = arith.constant 1 : index
    %c0_9 = arith.constant 0 : index
    %40 = vector.load %arg4[%c1, %c0_9] : memref<8x128xf32, #tpu.memory_space<vmem>>, vector<1x128xf32>
    %c2 = arith.constant 2 : index
    %c0_10 = arith.constant 0 : index
    %41 = vector.load %arg4[%c2, %c0_10] : memref<8x128xf32, #tpu.memory_space<vmem>>, vector<1x128xf32>
    %c3 = arith.constant 3 : index
    %c0_11 = arith.constant 0 : index
    %42 = vector.load %arg4[%c3, %c0_11] : memref<8x128xf32, #tpu.memory_space<vmem>>, vector<1x128xf32>
    %c4 = arith.constant 4 : index
    %c0_12 = arith.constant 0 : index
    %43 = vector.load %arg4[%c4, %c0_12] : memref<8x128xf32, #tpu.memory_space<vmem>>, vector<1x128xf32>
    %44 = arith.truncf %38 : vector<16x48xf32> to vector<16x48xbf16>
    %c0_13 = arith.constant 0 : index
    %c0_14 = arith.constant 0 : index
    %45 = vector.load %arg2[%c0_13, %c0_14] : memref<48x128xbf16, #tpu.memory_space<vmem>>, vector<48x128xbf16>
    %cst_15 = arith.constant dense<0.000000e+00> : vector<16x128xf32>
    %46 = tpu.matmul %44, %45, %cst_15 {dimension_numbers = #tpu.dot_dimension_numbers<[1], [0], [0], [1], [0, 0, 1, 1], [], []>} : vector<16x48xbf16>, vector<48x128xbf16>, vector<16x128xf32> -> vector<16x128xf32>
    %47 = vector.broadcast %39 : vector<1x128xf32> to vector<16x128xf32>
    %48 = arith.addf %46, %47 : vector<16x128xf32>
    %cst_16 = arith.constant 0.000000e+00 : f32
    %49 = vector.broadcast %cst_16 : f32 to vector<16x128xf32>
    %50 = arith.maximumf %48, %49 : vector<16x128xf32>
    %c0_17 = arith.constant 0 : index
    %c0_18 = arith.constant 0 : index
    %51 = vector.load %arg3[%c0_17, %c0_18] : memref<128x512xbf16, #tpu.memory_space<vmem>>, vector<128x128xbf16>
    %c0_19 = arith.constant 0 : index
    %c128 = arith.constant 128 : index
    %52 = vector.load %arg3[%c0_19, %c128] : memref<128x512xbf16, #tpu.memory_space<vmem>>, vector<128x128xbf16>
    %53 = arith.truncf %50 : vector<16x128xf32> to vector<16x128xbf16>
    %cst_20 = arith.constant dense<0.000000e+00> : vector<16x128xf32>
    %54 = tpu.matmul %53, %51, %cst_20 {dimension_numbers = #tpu.dot_dimension_numbers<[1], [0], [0], [1], [0, 0, 1, 1], [], []>} : vector<16x128xbf16>, vector<128x128xbf16>, vector<16x128xf32> -> vector<16x128xf32>
    %55 = vector.broadcast %40 : vector<1x128xf32> to vector<16x128xf32>
    %56 = arith.addf %54, %55 : vector<16x128xf32>
    %cst_21 = arith.constant 0.000000e+00 : f32
    %57 = vector.broadcast %cst_21 : f32 to vector<16x128xf32>
    %58 = arith.maximumf %56, %57 : vector<16x128xf32>
    %59 = arith.truncf %58 : vector<16x128xf32> to vector<16x128xbf16>
    %cst_22 = arith.constant dense<0.000000e+00> : vector<16x128xf32>
    %60 = tpu.matmul %59, %52, %cst_22 {dimension_numbers = #tpu.dot_dimension_numbers<[1], [0], [0], [1], [0, 0, 1, 1], [], []>} : vector<16x128xbf16>, vector<128x128xbf16>, vector<16x128xf32> -> vector<16x128xf32>
    %61 = vector.broadcast %41 : vector<1x128xf32> to vector<16x128xf32>
    %62 = arith.addf %60, %61 : vector<16x128xf32>
    %63 = arith.addf %50, %62 : vector<16x128xf32>
    %cst_23 = arith.constant 0.000000e+00 : f32
    %64 = vector.broadcast %cst_23 : f32 to vector<16x128xf32>
    %65 = arith.maximumf %63, %64 : vector<16x128xf32>
    %c0_24 = arith.constant 0 : index
    %c256 = arith.constant 256 : index
    %66 = vector.load %arg3[%c0_24, %c256] : memref<128x512xbf16, #tpu.memory_space<vmem>>, vector<128x128xbf16>
    %c0_25 = arith.constant 0 : index
    %c384 = arith.constant 384 : index
    %67 = vector.load %arg3[%c0_25, %c384] : memref<128x512xbf16, #tpu.memory_space<vmem>>, vector<128x128xbf16>
    %68 = arith.truncf %65 : vector<16x128xf32> to vector<16x128xbf16>
    %cst_26 = arith.constant dense<0.000000e+00> : vector<16x128xf32>
    %69 = tpu.matmul %68, %66, %cst_26 {dimension_numbers = #tpu.dot_dimension_numbers<[1], [0], [0], [1], [0, 0, 1, 1], [], []>} : vector<16x128xbf16>, vector<128x128xbf16>, vector<16x128xf32> -> vector<16x128xf32>
    %70 = vector.broadcast %42 : vector<1x128xf32> to vector<16x128xf32>
    %71 = arith.addf %69, %70 : vector<16x128xf32>
    %cst_27 = arith.constant 0.000000e+00 : f32
    %72 = vector.broadcast %cst_27 : f32 to vector<16x128xf32>
    %73 = arith.maximumf %71, %72 : vector<16x128xf32>
    %74 = arith.truncf %73 : vector<16x128xf32> to vector<16x128xbf16>
    %cst_28 = arith.constant dense<0.000000e+00> : vector<16x128xf32>
    %75 = tpu.matmul %74, %67, %cst_28 {dimension_numbers = #tpu.dot_dimension_numbers<[1], [0], [0], [1], [0, 0, 1, 1], [], []>} : vector<16x128xbf16>, vector<128x128xbf16>, vector<16x128xf32> -> vector<16x128xf32>
    %76 = vector.broadcast %43 : vector<1x128xf32> to vector<16x128xf32>
    %77 = arith.addf %75, %76 : vector<16x128xf32>
    %78 = arith.addf %65, %77 : vector<16x128xf32>
    %cst_29 = arith.constant 0.000000e+00 : f32
    %79 = vector.broadcast %cst_29 : f32 to vector<16x128xf32>
    %80 = arith.maximumf %78, %79 : vector<16x128xf32>
    %81 = vector.shape_cast %80 : vector<16x128xf32> to vector<2x8x128xf32>
    %cst_30 = arith.constant dense<0.000000e+00> : vector<2x128xf32>
    %82 = vector.multi_reduction <add>, %81, %cst_30 [1] : vector<2x8x128xf32> to vector<2x128xf32>
    %cst_31 = arith.constant 1.250000e-01 : f32
    %83 = vector.broadcast %cst_31 : f32 to vector<2x128xf32>
    %84 = arith.mulf %82, %83 : vector<2x128xf32>
    %c0_32 = arith.constant 0 : index
    %c0_33 = arith.constant 0 : index
    %85 = vector.load %arg5[%c0_32, %c0_33] : memref<2x128xf32, #tpu.memory_space<vmem>>, vector<2x128xf32>
    tpu.vector_store %arg5[%c0_32, %c0_33], %84 {strides = array<i32>} : memref<2x128xf32, #tpu.memory_space<vmem>>, vector<2x128xf32>,
    return
  }
  func.func @transform_0(%arg0: i32) -> (i32, i32) {
    %c0_i32 = arith.constant 0 : i32
    %c0_i32_0 = arith.constant 0 : i32
    return %arg0, %c0_i32 : i32, i32
  }
  func.func @transform_1(%arg0: i32) -> (i32, i32) {
    %c0_i32 = arith.constant 0 : i32
    %c0_i32_0 = arith.constant 0 : i32
    %c0_i32_1 = arith.constant 0 : i32
    return %c0_i32, %c0_i32_0 : i32, i32
  }
  func.func @transform_2(%arg0: i32) -> (i32, i32) {
    %c0_i32 = arith.constant 0 : i32
    %c0_i32_0 = arith.constant 0 : i32
    %c0_i32_1 = arith.constant 0 : i32
    return %c0_i32, %c0_i32_0 : i32, i32
  }
  func.func @transform_3(%arg0: i32) -> (i32, i32) {
    %c0_i32 = arith.constant 0 : i32
    %c0_i32_0 = arith.constant 0 : i32
    %c0_i32_1 = arith.constant 0 : i32
    return %c0_i32, %c0_i32_0 : i32, i32
  }
  func.func @transform_4(%arg0: i32) -> (i32, i32) {
    %c0_i32 = arith.constant 0 : i32
    %c0_i32_0 = arith.constant 0 : i32
    return %arg0, %c0_i32 : i32, i32
  }
}

</mosaic_0001>

<bundles_post_ra>
// kernel: tpu_custom_call.1
= control target key start
LH: loop header
LB: loop body
LE: loop exit
PB: predicated region body
PF: predicated region fallthrough
CT: control target
= control target key end

     0   :  { %9 = vsyncpa [#allocation3], 0  ;;  %s1205_s0 = inlined_call_operand.hbm [shape: f32[16,48], index: 0, kind: input, shape index: {}]   ;;  %s1206_s1 = inlined_call_operand.hbm [shape: bf16[48,128], index: 1, kind: input, shape index: {}]   ;;  %s1207_s2 = inlined_call_operand.hbm [shape: bf16[128,512], index: 2, kind: input, shape index: {}]   ;;  %s1208_s3 = inlined_call_operand.vmem [shape: f32[8,128], index: 3, kind: input, shape index: {}]   ;;  %s1209_s4 = inlined_call_operand.hbm [shape: f32[2,128], index: 4, kind: output, shape index: {}]  }
   0x1   :  { %10 = vsyncpa [#allocation6], 0 }
   0x2   :  { %11 = vsyncpa [#allocation4], 0  ;;  %s1001_s15 = smov [#allocation5]   ;;  %s907_s19 = scalar_lea.hbm %s1206_s1, 384 }
   0x3   :  { %s29_s16 = sshll.u32 %s1001_s15, 4  ;;  %p908_p0 = scmp.ne.s32.totalorder %s1206_s1, %s907_s19  ;;  %s30_s16 = int_to_ptr.vmem [resolvable:$true] %s29_s16 }
   0x4   :  { %p911_p1 = scmp.lt.u32.totalorder %s907_s19, %s1206_s1 }
   0x6   :  { %p913_p2 = pnand %p911_p1, %p908_p0 }
   0x8   :  { %916 = shalt.err (!%p913_p2)
}
   0x9   :  { %s917_s24 = scalar_lea.vmem %s30_s16, 384  ;;  %p922_p4 = scmp.lt.s32.totalorder %s30_s16, %s30_s16 }
   0xa   :  { %p918_p3 = scmp.ne.s32.totalorder %s30_s16, %s917_s24  ;;  %p923_p5 = scmp.lt.s32.totalorder %s917_s24, %s917_s24 }
   0xc   :  { %p924_p6 = por %p923_p5, %p922_p4 }
   0xe   :  { %p925_p7 = pnand %p924_p6, %p918_p3 }
  0x10   :  { %928 = shalt.err (!%p925_p7)
}
  0x11   :  { %s1002_s25 = smov 64   ;;  %s1003_s26 = smov 4  }
  0x12   :  { %35 = dma.hbm_to_vmem [thread:$0]  %s1206_s1, 384, %s30_s16, [#allocation6], %s1002_s25, %s1002_s25, %s1003_s26  }
  0x13   :  { %s1004_s29 = smov [#allocation2]   ;;  %s929_s7 = scalar_lea.hbm %s1205_s0, 256 }
  0x14   :  { %s17_s30 = sshll.u32 %s1004_s29, 4  ;;  %p930_p8 = scmp.ne.s32.totalorder %s1205_s0, %s929_s7  ;;  %s18_s30 = int_to_ptr.vmem [resolvable:$true] %s17_s30 }
  0x15   :  { %p933_p9 = scmp.lt.u32.totalorder %s929_s7, %s1205_s0 }
  0x17   :  { %p935_p10 = pnand %p933_p9, %p930_p8 }
  0x19   :  { %938 = shalt.err (!%p935_p10)
}
  0x1a   :  { %s939_s12 = scalar_lea.vmem %s18_s30, 256  ;;  %p944_p12 = scmp.lt.s32.totalorder %s18_s30, %s18_s30 }
  0x1b   :  { %p940_p11 = scmp.ne.s32.totalorder %s18_s30, %s939_s12  ;;  %p945_p13 = scmp.lt.s32.totalorder %s939_s12, %s939_s12 }
  0x1d   :  { %p946_p0 = por %p945_p13, %p944_p12 }
  0x1f   :  { %p947_p1 = pnand %p946_p0, %p940_p11 }
  0x21   :  { %950 = shalt.err (!%p947_p1)
}
  0x22   :  { %s1005_s1 = smov 128   ;;  %s1006_s13 = smov 8  }
  0x23   :  { %23 = dma.hbm_to_vmem [thread:$0]  %s1205_s0, 256, %s18_s30, [#allocation3], %s1005_s1, %s1005_s1, %s1006_s13  }
  0x24   :  { %s1007_s16 = smov [#allocation7]   ;;  %s951_s20 = scalar_lea.hbm %s1207_s2, 4096 }
  0x25   :  { %s41_s17 = sshll.u32 %s1007_s16, 4  ;;  %p952_p2 = scmp.ne.s32.totalorder %s1207_s2, %s951_s20  ;;  %s42_s17 = int_to_ptr.vmem [resolvable:$true] %s41_s17 }
  0x26   :  { %p955_p3 = scmp.lt.u32.totalorder %s951_s20, %s1207_s2 }
  0x28   :  { %p957_p4 = pnand %p955_p3, %p952_p2 }
  0x2a   :  { %960 = shalt.err (!%p957_p4)
}
  0x2b   :  { %s961_s25 = scalar_lea.vmem %s42_s17, 4096  ;;  %p966_p6 = scmp.lt.s32.totalorder %s42_s17, %s42_s17 }
  0x2c   :  { %p962_p5 = scmp.ne.s32.totalorder %s42_s17, %s961_s25  ;;  %p967_p7 = scmp.lt.s32.totalorder %s961_s25, %s961_s25 }
  0x2e   :  { %p968_p8 = por %p967_p7, %p966_p6 }
  0x30   :  { %p969_p9 = pnand %p968_p8, %p962_p5 }
  0x32   :  { %972 = shalt.err (!%p969_p9)
}
  0x33   :  { %s1008_s0 = smov 256   ;;  %s1009_s26 = smov 16  }
  0x34   :  { %47 = dma.hbm_to_vmem [thread:$0]  %s1207_s2, 4096, %s42_s17, [#allocation6], %s1008_s0, %s1008_s0, %s1009_s26  }
  0x35   :  { %995 = dma.done.wait [#allocation3], 256  }
  0x36   :  { %996 = vsyncadd [#allocation3], 4294967040 }
  0x37   :  { %997 = dma.done.wait [#allocation6], 4480  }
  0x38   :  { %998 = vsyncadd [#allocation6], 4294962816  ;;  %v64_v0 = vlaneseq  ;;  %v1010_v1 = vmov 0.0   ;;  %vm1011_vm0 = vmmov 0   ;;  %v872_v7 = vld [vmem:[#allocation5] sm:$0xff]   ;;  %v873_v10 = vld [vmem:[#allocation5 + $0x8] sm:$0xff]  }
  0x39   :  { %770 = vmatprep.subr.bf16.mxu0 %v1010_v1  ;;  %776 = vmatprep.mubr.msk.bf16.mxu0 %vm1011_vm0, %v1010_v1  ;;  %v60_v12 = vld [vmem:[#allocation2] sm:$0xff]  ;;  %v61_v13 = vld [vmem:[#allocation2 + $0x8] sm:$0xff] }
  0x3a   :  { %v65_v2 = vshrl.u32 %v64_v0, 7  ;;  %v76_v3 = vand.u32 127, %v64_v0  ;;  %780 = vmatprep.subr.bf16.mxu1 %v1010_v1  ;;  %796 = vmatprep.mubr.msk.bf16.mxu1 %vm1011_vm0, %v1010_v1  ;;  %v874_v16 = vld [vmem:[#allocation5 + $0x10] sm:$0xff]   ;;  %v62_v17 = vrot.slane %v60_v12, 7  ;;  %v63_v18 = vrot.slane %v61_v13, 7 }
  0x3b   :  { %771 = vmatpush3.bf16.msra.mxu0 %v872_v7  ;;  %v69_v19 = vrot.slane %v60_v12, 1  ;;  %v70_v20 = vrot.slane %v61_v13, 1  ;;  %v875_v22 = vld [vmem:[#allocation7] ss:$16 sps:$4 sm:$0xff]   ;;  %v883_v41 = vld [vmem:[#allocation7 + $0x4] ss:$16 sps:$4 sm:$0xff]  }
  0x3c   :  { %v74_v4 = vadd.s32 8, %v65_v2  ;;  %v81_v5 = vand.u32 7, %v65_v2  ;;  %vm102_vm1 = vcmp.ge.s32.totalorder %v76_v3, 6  ;;  %vm103_vm2 = vcmp.lt.s32.totalorder %v76_v3, 12  ;;  %772 = vmatprep.subr.bf16.mxu0 %v1010_v1  ;;  %781 = vmatpush3.bf16.msra.mxu1 %v875_v22  ;;  %v876_v27 = vld [vmem:[#allocation7 + $0x20] ss:$16 sps:$4 sm:$0xff]  }
  0x3d   :  { %vm101_vm4 = vcmp.lt.s32.totalorder %v76_v3, 6  ;;  %vm1080_vm5 = vmand %vm102_vm1, %vm103_vm2  ;;  %vm66_vm8 = vcmp.lt.s32.totalorder %v65_v2, 1  ;;  %vm71_vm9 = vcmp.lt.s32.totalorder %v65_v2, 7  ;;  %782 = vmatprep.subr.bf16.mxu1 %v1010_v1  ;;  %vm154_vm1 = vcmask 392192   ;;  %v877_v35 = vld [vmem:[#allocation7 + $0x40] ss:$16 sps:$4 sm:$0xff]  }
  0x3e   :  { %v88_v6 = vand.u32 7, %v74_v4  ;;  %vm105_vm3 = vcmp.ne.s32.totalorder %v81_v5, 0  ;;  %vm1088_vm7 = vcmp.ne.s32.totalorder %v81_v5, 7  ;;  %v72_v23 = vsel %vm71_vm9, %v69_v19, %v70_v20  ;;  %vm113_vm15 = vmor %vm101_vm4, %vm1080_vm5  ;;  %v878_v36 = vld [vmem:[#allocation7 + $0x60] ss:$16 sps:$4 sm:$0xff]  }
  0x3f   :  { %vm1094_vm10 = vmand %vm101_vm4, %vm105_vm3  ;;  %773 = vmatpush3.bf16.msra.mxu0 %v873_v10  ;;  %v73_v24 = vsel %vm71_vm9, %v70_v20, %v69_v19  ;;  %v67_v25 = vsel %vm66_vm8, %v62_v17, %v63_v18  ;;  %v68_v26 = vsel %vm66_vm8, %v63_v18, %v62_v17  ;;  %v114_v28 = vsel %vm113_vm15, 0.0, %v60_v12  ;;  %v879_v37 = vld [vmem:[#allocation7 + $0x80] ss:$16 sps:$4 sm:$0xff]   ;;  %v884_v42 = vld [vmem:[#allocation7 + $0x24] ss:$16 sps:$4 sm:$0xff]  }
  0x40   :  { %vm1084_vm6 = vcmp.ne.s32.totalorder %v88_v6, 0  ;;  %vm1098_vm11 = vcmp.ne.s32.totalorder %v88_v6, 7  ;;  %vm111_vm13 = vmand %vm1080_vm5, %vm1088_vm7  ;;  %774 = vmatprep.subr.bf16.mxu0 %v1010_v1  ;;  %v115_v29 = vsel %vm113_vm15, 0.0, %v61_v13  ;;  %783 = vmatpush3.bf16.msra.mxu1 %v876_v27  ;;  %v880_v38 = vld [vmem:[#allocation7 + $0xa0] ss:$16 sps:$4 sm:$0xff]  }
  0x41   :  { %vm1105_vm12 = vmand %vm101_vm4, %vm1084_vm6  ;;  %v116_v30 = vsel %vm111_vm13, %v72_v23, %v114_v28  ;;  %784 = vmatprep.subr.bf16.mxu1 %v1010_v1  ;;  %v881_v39 = vld [vmem:[#allocation7 + $0xc0] ss:$16 sps:$4 sm:$0xff]   ;;  %v885_v43 = vld [vmem:[#allocation7 + $0x44] ss:$16 sps:$4 sm:$0xff]  }
  0x42   :  { %vm112_vm14 = vmand %vm1080_vm5, %vm1098_vm11  ;;  %v118_v32 = vsel %vm1094_vm10, %v68_v26, %v116_v30  ;;  %v882_v40 = vld [vmem:[#allocation7 + $0xe0] ss:$16 sps:$4 sm:$0xff]   ;;  %v886_v44 = vld [vmem:[#allocation7 + $0x64] ss:$16 sps:$4 sm:$0xff]  }
  0x43   :  { %v117_v31 = vsel %vm112_vm14, %v73_v24, %v115_v29  ;;  %775 = vmatpush3.bf16.msra.mxu0 %v874_v16  ;;  %v887_v45 = vld [vmem:[#allocation7 + $0x84] ss:$16 sps:$4 sm:$0xff]   ;;  %v689_v47 = vld [vmem:[%s1208_s3] ss:$0 sm:$0xff]  ;;  %v694_v0 = vld [vmem:[%s1208_s3 + $0x1] ss:$0 sm:$0xff] }
  0x44   :  { %v119_v33 = vsel %vm1105_vm12, %v67_v25, %v117_v31  ;;  %800 = vmatprep.subr.bf16.mxu0 %v1010_v1  ;;  %785 = vmatpush3.bf16.msra.mxu1 %v877_v35  ;;  %v888_v46 = vld [vmem:[#allocation7 + $0xa4] ss:$16 sps:$4 sm:$0xff]   ;;  %v891_v59 = vld [vmem:[#allocation7 + $0x8] ss:$16 sps:$4 sm:$0xff]   ;;  %v899_v14 = vld [vmem:[#allocation7 + $0xc] ss:$16 sps:$4 sm:$0xff]  }
  0x45   :  { %v125_v34 = vpack.c.bf16 %v119_v33, %v118_v32  ;;  %786 = vmatprep.subr.bf16.mxu1 %v1010_v1  ;;  %v889_v57 = vld [vmem:[#allocation7 + $0xc4] ss:$16 sps:$4 sm:$0xff]   ;;  %v892_v60 = vld [vmem:[#allocation7 + $0x28] ss:$16 sps:$4 sm:$0xff]   ;;  %v900_v15 = vld [vmem:[#allocation7 + $0x2c] ss:$16 sps:$4 sm:$0xff]  }
  0x46   :  { %v890_v58 = vld [vmem:[#allocation7 + $0xe4] ss:$16 sps:$4 sm:$0xff]   ;;  %v893_v61 = vld [vmem:[#allocation7 + $0x48] ss:$16 sps:$4 sm:$0xff]   ;;  %v901_v16 = vld [vmem:[#allocation7 + $0x4c] ss:$16 sps:$4 sm:$0xff]  }
  0x47   :  { %777 = vmatmul.mubr.msk.bf16.vlgmr.msra.gmra.mrb[0].mxu0 %vm154_vm1, %v125_v34  ;;  %v894_v62 = vld [vmem:[#allocation7 + $0x68] ss:$16 sps:$4 sm:$0xff]   ;;  %v902_v17 = vld [vmem:[#allocation7 + $0x6c] ss:$16 sps:$4 sm:$0xff]  }
  0x48   :  { %816 = vmatprep.mubr.msk.bf16.mxu0 %vm1011_vm0, %v1010_v1  ;;  %787 = vmatpush3.bf16.msra.mxu1 %v878_v36  ;;  %v895_v63 = vld [vmem:[#allocation7 + $0x88] ss:$16 sps:$4 sm:$0xff]   ;;  %v903_v18 = vld [vmem:[#allocation7 + $0x8c] ss:$16 sps:$4 sm:$0xff]  }
  0x49   :  { %788 = vmatprep.subr.bf16.mxu1 %v1010_v1  ;;  %801 = vmatpush3.bf16.msra.mxu0 %v883_v41  ;;  %v896_v11 = vld [vmem:[#allocation7 + $0xa8] ss:$16 sps:$4 sm:$0xff]   ;;  %v904_v19 = vld [vmem:[#allocation7 + $0xac] ss:$16 sps:$4 sm:$0xff]  }
  0x4a   :  { %802 = vmatprep.subr.bf16.mxu0 %v1010_v1  ;;  %v897_v12 = vld [vmem:[#allocation7 + $0xc8] ss:$16 sps:$4 sm:$0xff]   ;;  %v905_v32 = vld [vmem:[#allocation7 + $0xcc] ss:$16 sps:$4 sm:$0xff]  }
  0x4b   :  { %v898_v13 = vld [vmem:[#allocation7 + $0xe8] ss:$16 sps:$4 sm:$0xff]   ;;  %v906_v33 = vld [vmem:[#allocation7 + $0xec] ss:$16 sps:$4 sm:$0xff]  }
  0x4c   :  { %789 = vmatpush3.bf16.msra.mxu1 %v879_v37  ;;  %v703_v20 = vld [vmem:[%s1208_s3 + $0x2] ss:$0 sm:$0xff]  ;;  %v712_v34 = vld [vmem:[%s1208_s3 + $0x3] ss:$0 sm:$0xff] }
  0x4d   :  { %790 = vmatprep.subr.bf16.mxu1 %v1010_v1  ;;  %803 = vmatpush3.bf16.msra.mxu0 %v884_v42 }
  0x4e   :  { %804 = vmatprep.subr.bf16.mxu0 %v1010_v1 }
  0x50   :  { %791 = vmatpush3.bf16.msra.mxu1 %v880_v38 }
  0x51   :  { %792 = vmatprep.subr.bf16.mxu1 %v1010_v1  ;;  %805 = vmatpush3.bf16.msra.mxu0 %v885_v43 }
  0x52   :  { %806 = vmatprep.subr.bf16.mxu0 %v1010_v1 }
  0x54   :  { %793 = vmatpush3.bf16.msra.mxu1 %v881_v39 }
  0x55   :  { %794 = vmatprep.subr.bf16.mxu1 %v1010_v1  ;;  %807 = vmatpush3.bf16.msra.mxu0 %v886_v44 }
  0x56   :  { %808 = vmatprep.subr.bf16.mxu0 %v1010_v1 }
  0x58   :  { %795 = vmatpush3.bf16.msra.mxu1 %v882_v40 }
  0x59   :  { %820 = vmatprep.subr.bf16.mxu1 %v1010_v1  ;;  %809 = vmatpush3.bf16.msra.mxu0 %v887_v45 }
  0x5a   :  { %810 = vmatprep.subr.bf16.mxu0 %v1010_v1 }
  0x5d   :  { %811 = vmatpush3.bf16.msra.mxu0 %v888_v46 }
  0x5e   :  { %812 = vmatprep.subr.bf16.mxu0 %v1010_v1 }
  0x61   :  { %813 = vmatpush3.bf16.msra.mxu0 %v889_v57 }
  0x62   :  { %814 = vmatprep.subr.bf16.mxu0 %v1010_v1 }
  0x65   :  { %815 = vmatpush3.bf16.msra.mxu0 %v890_v58 }
  0x66   :  { %840 = vmatprep.subr.bf16.mxu0 %v1010_v1 }
 0x11a   :  { %v192_v48 = vpop.f32.mrb[0].mxu0 }
 0x11b   :  { %v1147_v49 = vadd.f32 %v689_v47, %v192_v48  ;;  %v778_v50 = vpop.f32.mrb[1].mxu0 }
 0x11c   :  { %v195_v51 = vpop.f32.mrb[2].mxu0 }
 0x11d   :  { %v1149_v52 = vadd.f32 %v689_v47, %v195_v51  ;;  %v779_v53 = vpop.f32.mrb[3].mxu0  ;;  %v199_v54 = vmax.f32 %v1147_v49, 0.0 }
 0x11f   :  { %v200_v55 = vmax.f32 %v1149_v52, 0.0 }
 0x121   :  { %v233_v56 = vpack.c.bf16 %v200_v55, %v199_v54 }
 0x123   :  { %797 = vmatmul.mubr.bf16.vlgmr.msra.gmra.mrb[0].mxu1 %v233_v56 }
 0x124   :  { %836 = vmatprep.mubr.msk.bf16.mxu1 %vm1011_vm0, %v1010_v1  ;;  %821 = vmatpush3.bf16.msra.mxu1 %v891_v59 }
 0x125   :  { %822 = vmatprep.subr.bf16.mxu1 %v1010_v1 }
 0x128   :  { %823 = vmatpush3.bf16.msra.mxu1 %v892_v60 }
 0x129   :  { %824 = vmatprep.subr.bf16.mxu1 %v1010_v1 }
 0x12c   :  { %825 = vmatpush3.bf16.msra.mxu1 %v893_v61 }
 0x12d   :  { %826 = vmatprep.subr.bf16.mxu1 %v1010_v1 }
 0x130   :  { %827 = vmatpush3.bf16.msra.mxu1 %v894_v62 }
 0x131   :  { %828 = vmatprep.subr.bf16.mxu1 %v1010_v1 }
 0x134   :  { %829 = vmatpush3.bf16.msra.mxu1 %v895_v63 }
 0x135   :  { %830 = vmatprep.subr.bf16.mxu1 %v1010_v1 }
 0x138   :  { %831 = vmatpush3.bf16.msra.mxu1 %v896_v11 }
 0x139   :  { %832 = vmatprep.subr.bf16.mxu1 %v1010_v1 }
 0x13c   :  { %833 = vmatpush3.bf16.msra.mxu1 %v897_v12 }
 0x13d   :  { %834 = vmatprep.subr.bf16.mxu1 %v1010_v1 }
 0x140   :  { %835 = vmatpush3.bf16.msra.mxu1 %v898_v13 }
 0x1f6   :  { %v320_v2 = vpop.f32.mrb[0].mxu1 }
 0x1f7   :  { %v321_v3 = vadd.f32 %v694_v0, %v320_v2  ;;  %v798_v4 = vpop.f32.mrb[1].mxu1 }
 0x1f8   :  { %v323_v5 = vpop.f32.mrb[2].mxu1 }
 0x1f9   :  { %v324_v6 = vadd.f32 %v694_v0, %v323_v5  ;;  %v799_v7 = vpop.f32.mrb[3].mxu1  ;;  %v327_v8 = vmax.f32 %v321_v3, 0.0 }
 0x1fb   :  { %v328_v9 = vmax.f32 %v324_v6, 0.0 }
 0x1fd   :  { %v329_v10 = vpack.c.bf16 %v328_v9, %v327_v8 }
 0x1ff   :  { %817 = vmatmul.mubr.bf16.vlgmr.msra.gmra.mrb[4].mxu0 %v329_v10 }
 0x200   :  { %856 = vmatprep.mubr.msk.bf16.mxu0 %vm1011_vm0, %v1010_v1  ;;  %841 = vmatpush3.bf16.msra.mxu0 %v899_v14  ;;  %vm669_vm0 = vcmask 1041409  }
 0x201   :  { %842 = vmatprep.subr.bf16.mxu0 %v1010_v1 }
 0x204   :  { %843 = vmatpush3.bf16.msra.mxu0 %v900_v15 }
 0x205   :  { %844 = vmatprep.subr.bf16.mxu0 %v1010_v1 }
 0x208   :  { %845 = vmatpush3.bf16.msra.mxu0 %v901_v16 }
 0x209   :  { %846 = vmatprep.subr.bf16.mxu0 %v1010_v1 }
 0x20c   :  { %847 = vmatpush3.bf16.msra.mxu0 %v902_v17 }
 0x20d   :  { %848 = vmatprep.subr.bf16.mxu0 %v1010_v1 }
 0x210   :  { %849 = vmatpush3.bf16.msra.mxu0 %v903_v18 }
 0x211   :  { %850 = vmatprep.subr.bf16.mxu0 %v1010_v1 }
 0x214   :  { %851 = vmatpush3.bf16.msra.mxu0 %v904_v19 }
 0x215   :  { %852 = vmatprep.subr.bf16.mxu0 %v1010_v1 }
 0x218   :  { %853 = vmatpush3.bf16.msra.mxu0 %v905_v32 }
 0x219   :  { %854 = vmatprep.subr.bf16.mxu0 %v1010_v1  ;;  %v721_v1 = vld [vmem:[%s1208_s3 + $0x4] ss:$0 sm:$0xff]  ;;  %s1012_s3 = smov [#allocation8]  }
 0x21a   :  { %s679_s12 = sshll.u32 %s1012_s3, 4  ;;  %s680_s12 = int_to_ptr.vmem [resolvable:$true] %s679_s12 }
 0x21b   :  { %s973_s1 = scalar_lea.vmem %s680_s12, 32  ;;  %p978_p11 = scmp.lt.s32.totalorder %s680_s12, %s680_s12 }
 0x21c   :  { %855 = vmatpush3.bf16.msra.mxu0 %v906_v33  ;;  %p974_p10 = scmp.ne.s32.totalorder %s680_s12, %s973_s1  ;;  %p979_p12 = scmp.lt.s32.totalorder %s973_s1, %s973_s1 }
 0x21e   :  { %p980_p13 = por %p979_p12, %p978_p11 }
 0x220   :  { %p981_p0 = pnand %p980_p13, %p974_p10 }
 0x2d2   :  { %v416_v21 = vpop.f32.mrb[4].mxu0 }
 0x2d3   :  { %v417_v22 = vadd.f32 %v703_v20, %v416_v21  ;;  %v818_v23 = vpop.f32.mrb[5].mxu0 }
 0x2d4   :  { %v419_v24 = vpop.f32.mrb[6].mxu0 }
 0x2d5   :  { %v423_v25 = vadd.f32 %v417_v22, %v199_v54  ;;  %v420_v26 = vadd.f32 %v703_v20, %v419_v24  ;;  %v819_v27 = vpop.f32.mrb[7].mxu0 }
 0x2d7   :  { %v424_v28 = vadd.f32 %v420_v26, %v200_v55  ;;  %v425_v29 = vmax.f32 %v423_v25, 0.0 }
 0x2d9   :  { %v426_v30 = vmax.f32 %v424_v28, 0.0 }
 0x2db   :  { %v459_v31 = vpack.c.bf16 %v426_v30, %v425_v29 }
 0x2dd   :  { %837 = vmatmul.mubr.bf16.vlgmr.msra.gmra.mrb[4].mxu1 %v459_v31 }
 0x3b0   :  { %v546_v35 = vpop.f32.mrb[4].mxu1 }
 0x3b1   :  { %v547_v36 = vadd.f32 %v712_v34, %v546_v35  ;;  %v838_v37 = vpop.f32.mrb[5].mxu1 }
 0x3b2   :  { %v549_v38 = vpop.f32.mrb[6].mxu1 }
 0x3b3   :  { %v550_v39 = vadd.f32 %v712_v34, %v549_v38  ;;  %v839_v40 = vpop.f32.mrb[7].mxu1  ;;  %v553_v41 = vmax.f32 %v547_v36, 0.0 }
 0x3b5   :  { %v554_v42 = vmax.f32 %v550_v39, 0.0 }
 0x3b7   :  { %v555_v43 = vpack.c.bf16 %v554_v42, %v553_v41 }
 0x3b9   :  { %857 = vmatmul.mubr.bf16.vlgmr.msra.gmra.mrb[8].mxu0 %v555_v43 }
 0x48c   :  { %v642_v44 = vpop.f32.mrb[8].mxu0 }
 0x48d   :  { %v643_v45 = vadd.f32 %v721_v1, %v642_v44  ;;  %v858_v46 = vpop.f32.mrb[9].mxu0 }
 0x48e   :  { %v645_v47 = vpop.f32.mrb[10].mxu0 }
 0x48f   :  { %v649_v48 = vadd.f32 %v643_v45, %v425_v29  ;;  %v646_v49 = vadd.f32 %v721_v1, %v645_v47  ;;  %v859_v50 = vpop.f32.mrb[11].mxu0 }
 0x491   :  { %v651_v51 = vmax.f32 %v649_v48, 0.0  ;;  %v650_v52 = vadd.f32 %v646_v49, %v426_v30 }
 0x493   :  { %v653_v53 = vrot.slane %v651_v51, 4  ;;  %v652_v54 = vmax.f32 %v650_v52, 0.0 }
 0x495   :  { %v654_v55 = vadd.f32 %v653_v53, %v651_v51  ;;  %v659_v56 = vrot.slane %v652_v54, 4 }
 0x497   :  { %v655_v57 = vrot.slane %v654_v55, 2  ;;  %v660_v58 = vadd.f32 %v659_v56, %v652_v54 }
 0x499   :  { %v656_v59 = vadd.f32 %v655_v57, %v654_v55  ;;  %v661_v60 = vrot.slane %v660_v58, 2 }
 0x49b   :  { %v657_v61 = vrot.slane %v656_v59, 1  ;;  %v662_v62 = vadd.f32 %v661_v60, %v660_v58 }
 0x49d   :  { %v663_v63 = vrot.slane %v662_v62, 1  ;;  %v658_v0 = vadd.f32 %v657_v61, %v656_v59 }
 0x49f   :  { %v664_v2 = vadd.f32 %v663_v63, %v662_v62  ;;  %v665_v3 = vmul.f32 0.125, %v658_v0 }
 0x4a1   :  { %v666_v4 = vmul.f32 0.125, %v664_v2 }
 0x4a3   :  { %v670_v5 = vsel %vm669_vm0, %v666_v4, %v665_v3 }
 0x4a4   :  { %672 = vst [vmem:[#allocation8] sm:$0x3] %v670_v5 }
 0x4a5   :  { %984 = shalt.err (!%p981_p0)
}
 0x4a6   :  { %s985_s15 = scalar_lea.hbm %s1209_s4, 32 }
 0x4a7   :  { %p986_p1 = scmp.ne.s32.totalorder %s1209_s4, %s985_s15  ;;  %p989_p2 = scmp.lt.u32.totalorder %s985_s15, %s1209_s4 }
 0x4a9   :  { %p991_p3 = pnand %p989_p2, %p986_p1 }
 0x4ab   :  { %994 = shalt.err (!%p991_p3)
}
 0x4ac   :  { %682 = dma.vmem_to_hbm [thread:$0]  %s680_s12, 32, %s1209_s4, [#allocation4]  }
 0x4ad   :  { %999 = dma.done.wait [#allocation4], 32  }
 0x4ae   :  { %1000 = vsyncadd [#allocation4], 4294967264 }
 0x4af   :  { %686 = vsyncpa [#allocation3], 1 }
 0x4b0   :  { %687 = vsyncpa [#allocation6], 1 }
 0x4b1   :  { %688 = vsyncpa [#allocation4], 1 }

</bundles_post_ra>
